<compile_context>
chip_gen: v5e
topology: v5e:2x2
jax: 0.10.0
libtpu: 0.0.40
codegen_flags: <defaults>
</compile_context>

<pallas_src>
import functools

import jax
import jax.numpy as jnp
from jax.experimental import pallas as pl
from jax.experimental.pallas import tpu as pltpu


def _round_up(x, m):
    return ((x + m - 1) // m) * m


def _cdiv(a, b):
    return (a + b - 1) // b


def _tpu_vmem_and_cores():
    """Best-effort per-core VMEM capacity (bytes) and TensorCore count."""
    vmem_cap = 128 * 1024 * 1024
    num_tc = 1
    try:
        info = pltpu.get_tpu_info()
        vmem_cap = int(getattr(info, "vmem_capacity_bytes", vmem_cap))
    except Exception:
        pass
    try:
        kind = jax.devices()[0].device_kind.lower()
        if "v7" in kind:           # only v7x has 2 TensorCores per chip
            num_tc = 2
    except Exception:
        pass
    return vmem_cap, num_tc


def _choose_tiles(B, D_pad, H_pad, O_pad, itemsize, vmem_budget, num_tc):
    """Pick (block_b, block_h) that fit the per-generation VMEM budget."""
    sub = 16 if itemsize == 2 else 8          # packed-sublane multiple of the dtype
    desired_bb = 1024 if itemsize == 2 else 512

    def vmem_need(bb, bh):
        # double-buffered in/out tiles + f32 accumulator + live f32 hidden tile
        return (2 * (bb * D_pad + D_pad * bh + bh
                     + bh * O_pad + O_pad + bb * O_pad) * itemsize
                + bb * O_pad * 4 + bb * bh * 4)

    def max_bb(bh):
        bb = min(desired_bb, _round_up(B, sub))
        while bb > sub and vmem_need(bb, bh) > vmem_budget:
            bb = max(sub, _round_up(bb // 2, sub))
        return bb

    # Candidate hidden tiles: 128-multiple divisors of H_pad, largest first.
    # bh == H_pad (nh == 1) keeps both weight matrices VMEM-resident across all
    # batch tiles, so weights are streamed from HBM exactly once.
    m = H_pad // 128
    bh_candidates = [128 * d for d in range(m, 0, -1) if m % d == 0]

    bb_floor = min(_round_up(B, sub), 256)    # don't let residency crush the MXU M dim
    chosen = None
    for bh in bh_candidates:
        bb = max_bb(bh)
        if vmem_need(bb, bh) <= vmem_budget and bb >= bb_floor:
            chosen = (bb, bh)
            break
    if chosen is None:
        bh = bh_candidates[-1]                # 128
        chosen = (max_bb(bh), bh)
    bb, bh = chosen

    # Give the second TensorCore a batch tile of its own -- only on 2-TC chips.
    if num_tc >= 2 and _cdiv(B, bb) < 2 and bb > sub:
        bb = max(sub, _round_up(_cdiv(bb, 2), sub))

    return bb, bh


def _mlp2_kernel(x_ref, w1_ref, b1_ref, w2_ref, b2_ref, o_ref, acc_ref):
    """One (batch-tile i, hidden-tile j) grid step.

    h_j  = relu(x_tile @ W1[:, j] + b1[j])        (MXU + VPU)
    acc += h_j @ W2[j, :]                         (MXU, f32 accumulator)
    last j: out = relu(acc + b2)                  (VPU, lane-dense store)
    """
    j = pl.program_id(1)

    h = jnp.dot(x_ref[...], w1_ref[...], preferred_element_type=jnp.float32)
    h = jnp.maximum(h + b1_ref[...], 0.0)          # broadcast [1, bh] over rows
    # Intentional mixed precision: the f32 hidden activation is cast to the
    # weight dtype (no-op for f32, bf16 round for bf16 weights) so the second
    # matmul feeds the MXU with matching operand dtypes; accumulation stays f32.
    partial = jnp.dot(h.astype(w2_ref.dtype), w2_ref[...],
                      preferred_element_type=jnp.float32)

    @pl.when(j == 0)
    def _():
        acc_ref[...] = partial

    @pl.when(j > 0)
    def _():
        acc_ref[...] += partial

    @pl.when(j == pl.num_programs(1) - 1)
    def _():
        o_ref[...] = jnp.maximum(acc_ref[...] + b2_ref[...], 0.0).astype(o_ref.dtype)


def prepare_mlp2_params(w1, b1, w2, b2):
    """Pad weights/biases ONCE (lane dims to multiples of 128).

    Done outside the hot path so per-call work is only the (usually no-op)
    padding of x.  Returns padded params plus the logical out_dim.
    w1: [D_in, H], b1: [H], w2: [H, O], b2: [O]  (weights stored [in, out]).
    """
    D, H = w1.shape
    O = w2.shape[1]
    D_pad = _round_up(D, 128)
    H_pad = _round_up(H, 128)
    O_pad = _round_up(O, 128)
    # Zero padding keeps semantics: padded W/b entries are 0 and relu(0) = 0,
    # so padded hidden/output columns stay inert; padded rows are sliced off.
    w1p = jnp.pad(w1, ((0, D_pad - D), (0, H_pad - H)))
    b1p = jnp.pad(b1, (0, H_pad - H)).reshape(1, H_pad)
    w2p = jnp.pad(w2, ((0, H_pad - H), (0, O_pad - O)))
    b2p = jnp.pad(b2, (0, O_pad - O)).reshape(1, O_pad)
    return w1p, b1p, w2p, b2p, O


@functools.partial(jax.jit, static_argnames=("out_dim",))
def mlp2_forward(x, w1p, b1p, w2p, b2p, *, out_dim):
    """x: [B, D_in]; pre-padded params from prepare_mlp2_params -> [B, out_dim].

    Computes relu(relu(x @ w1 + b1) @ w2 + b2)  (== torch MLP2 forward with
    weights stored transposed, i.e. [in, out]).
    """
    B, D = x.shape
    D_pad, H_pad = w1p.shape
    O_pad = w2p.shape[1]
    dtype = x.dtype
    itemsize = jnp.dtype(dtype).itemsize

    vmem_cap, num_tc = _tpu_vmem_and_cores()
    vmem_budget = int(0.85 * vmem_cap)

    block_b, block_h = _choose_tiles(B, D_pad, H_pad, O_pad, itemsize,
                                     vmem_budget, num_tc)
    B_pad = _round_up(B, block_b)

    # x is the only per-call pad (no-op when B/D are already aligned).
    if B_pad == B and D_pad == D:
        xp = x
    else:
        xp = jnp.pad(x, ((0, B_pad - B), (0, D_pad - D)))

    nb = B_pad // block_b
    nh = H_pad // block_h

    # VMEM actually needed: double-buffered in/out tiles + f32 accumulator +
    # live f32 hidden tile.  Clamp the requested limit to the physical per-core
    # VMEM (64 MiB on v7x, 128 MiB on v5e/v6e) with headroom.
    need = (2 * (block_b * D_pad + D_pad * block_h + block_h
                 + block_h * O_pad + O_pad + block_b * O_pad) * itemsize
            + block_b * O_pad * 4 + block_b * block_h * 4)
    vmem_limit = int(min(max(need + (4 << 20), 32 << 20), int(0.92 * vmem_cap)))
    vmem_limit = max(vmem_limit, need + (1 << 20))
    vmem_limit = min(vmem_limit, vmem_cap)

    flops = 2 * B_pad * (D_pad * H_pad + H_pad * O_pad)
    # Weights are (re-)read once per batch tile unless nh == 1 (grid-invariant
    # block index -> resident); count the actual nb x traffic either way.
    weight_reads = 1 if nh == 1 else nb
    bytes_accessed = itemsize * (
        B_pad * D_pad + B_pad * O_pad
        + weight_reads * (D_pad * H_pad + H_pad + H_pad * O_pad + O_pad))
    bytes_accessed += 2 * 4 * B_pad * O_pad * max(nh - 1, 0)   # f32 acc RMW (advisory)

    out = pl.pallas_call(
        _mlp2_kernel,
        out_shape=jax.ShapeDtypeStruct((B_pad, O_pad), dtype),
        grid_spec=pltpu.PrefetchScalarGridSpec(
            num_scalar_prefetch=0,
            grid=(nb, nh),                                           # reduction axis last
            in_specs=[
                pl.BlockSpec((block_b, D_pad), lambda i, j: (i, 0)),   # x tile (resident over j)
                pl.BlockSpec((D_pad, block_h), lambda i, j: (0, j)),   # W1 column block
                pl.BlockSpec((1, block_h), lambda i, j: (0, j)),       # b1 block
                pl.BlockSpec((block_h, O_pad), lambda i, j: (j, 0)),   # W2 row block
                pl.BlockSpec((1, O_pad), lambda i, j: (0, 0)),         # b2 (grid-invariant)
            ],
            out_specs=pl.BlockSpec((block_b, O_pad), lambda i, j: (i, 0)),
            scratch_shapes=[pltpu.VMEM((block_b, O_pad), jnp.float32)],
        ),
        compiler_params=pltpu.CompilerParams(
            dimension_semantics=("parallel", "arbitrary"),
            vmem_limit_bytes=int(vmem_limit),
        ),
        cost_estimate=pl.CostEstimate(
            flops=int(flops), transcendentals=0, bytes_accessed=int(bytes_accessed)),
    )(xp, w1p, b1p, w2p, b2p)

    return out[:B, :out_dim]


def init_mlp2_params(key, int_dim, hidden_dim, out_dim, dtype=jnp.float32):
    """Deterministic init mimicking torch.nn.Linear defaults
    (uniform(-1/sqrt(fan_in), 1/sqrt(fan_in)) for weights and biases)."""
    k1, k2, k3, k4 = jax.random.split(key, 4)
    bound1 = 1.0 / (int_dim ** 0.5)
    bound2 = 1.0 / (hidden_dim ** 0.5)
    # Stored as [in, out] (transposed vs. PyTorch's [out, in]) for MXU layout.
    w1 = jax.random.uniform(k1, (int_dim, hidden_dim), dtype, -bound1, bound1)
    b1 = jax.random.uniform(k2, (hidden_dim,), dtype, -bound1, bound1)
    w2 = jax.random.uniform(k3, (hidden_dim, out_dim), dtype, -bound2, bound2)
    b2 = jax.random.uniform(k4, (out_dim,), dtype, -bound2, bound2)
    return w1, b1, w2, b2


def mlp2_reference(x, w1, b1, w2, b2):
    y = jnp.maximum(x @ w1 + b1, 0.0)
    return jnp.maximum(y @ w2 + b2, 0.0)


if __name__ == "__main__":
    key = jax.random.PRNGKey(0)
    kx, kp, kx2, kp2 = jax.random.split(key, 4)

    # --- small demo shapes (matching the module) -----------------------------
    B, int_dim, hidden_dim, out_dim = 8, 32, 64, 16
    x = jax.random.normal(kx, (B, int_dim), jnp.float32)
    w1, b1, w2, b2 = init_mlp2_params(kp, int_dim, hidden_dim, out_dim)
    prepped = prepare_mlp2_params(w1, b1, w2, b2)          # pad weights ONCE
    w1p, b1p, w2p, b2p, O = prepped

    out = jax.block_until_ready(mlp2_forward(x, w1p, b1p, w2p, b2p, out_dim=O))
    ref = mlp2_reference(x, w1, b1, w2, b2)
    assert out.shape == (B, out_dim)
    assert jnp.allclose(out, ref, atol=1e-5, rtol=1e-5), "f32 mismatch vs reference"

    # bf16 operands (mixed precision: bf16 MXU operands, f32 accumulation).
    xb = x.astype(jnp.bfloat16)
    w1b, b1b, w2b, b2b, Ob = prepare_mlp2_params(
        *(p.astype(jnp.bfloat16) for p in (w1, b1, w2, b2)))
    outb = jax.block_until_ready(mlp2_forward(xb, w1b, b1b, w2b, b2b, out_dim=Ob))
    assert jnp.allclose(outb.astype(jnp.float32), ref, atol=5e-2, rtol=5e-2), \
        "bf16 mismatch vs reference"

    # --- larger, unaligned shapes: exercises batch tiling, weight residency /
    # H-reduction axis, accumulator scratch and zero-padding paths.
    B2, D2, H2, O2 = 300, 200, 1000, 72
    x2 = jax.random.normal(kx2, (B2, D2), jnp.float32)
    p2 = init_mlp2_params(kp2, D2, H2, O2)
    w1p2, b1p2, w2p2, b2p2, Op2 = prepare_mlp2_params(*p2)
    out2 = jax.block_until_ready(
        mlp2_forward(x2, w1p2, b1p2, w2p2, b2p2, out_dim=Op2))
    ref2 = mlp2_reference(x2, *p2)
    assert out2.shape == (B2, O2)
    assert jnp.allclose(out2, ref2, atol=2e-2, rtol=2e-2), "tiled mismatch vs reference"

    print("KERNEL_OK")
</pallas_src>

<mosaic_0001>
module attributes {stable_mosaic.version = 11 : i64} {
  func.func @_mlp2_kernel(%arg0: i32, %arg1: i32, %arg2: memref<8x128xf32, #tpu.memory_space<vmem>>, %arg3: memref<128x128xf32, #tpu.memory_space<vmem>>, %arg4: memref<1x128xf32, #tpu.memory_space<vmem>>, %arg5: memref<128x128xf32, #tpu.memory_space<vmem>>, %arg6: memref<1x128xf32, #tpu.memory_space<vmem>>, %arg7: memref<8x128xf32, #tpu.memory_space<vmem>>, %arg8: memref<8x128xf32, #tpu.memory_space<vmem>>) attributes {dimension_semantics = [#tpu.dimension_semantics<parallel>, #tpu.dimension_semantics<arbitrary>], iteration_bounds = array<i64: 1, 1>, scalar_prefetch = 0 : i64, scratch_operands = 1 : i64, tpu.core_type = #tpu.core_type<tc>, window_params = [{transform_indices = @transform_0, window_bounds = array<i64: 8, 128>}, {transform_indices = @transform_1, window_bounds = array<i64: 128, 128>}, {transform_indices = @transform_2, window_bounds = array<i64: 1, 128>}, {transform_indices = @transform_3, window_bounds = array<i64: 128, 128>}, {pipeline_mode = #tpu.pipeline_mode<synchronous>, transform_indices = @transform_4, window_bounds = array<i64: 1, 128>}, {transform_indices = @transform_5, window_bounds = array<i64: 8, 128>}]} {
    %c0 = arith.constant 0 : index
    %c0_0 = arith.constant 0 : index
    %0 = vector.load %arg2[%c0, %c0_0] : memref<8x128xf32, #tpu.memory_space<vmem>>, vector<8x128xf32>
    %c0_1 = arith.constant 0 : index
    %c0_2 = arith.constant 0 : index
    %1 = vector.load %arg3[%c0_1, %c0_2] : memref<128x128xf32, #tpu.memory_space<vmem>>, vector<128x128xf32>
    %cst = arith.constant dense<0.000000e+00> : vector<8x128xf32>
    %2 = tpu.matmul %0, %1, %cst {dimension_numbers = #tpu.dot_dimension_numbers<[1], [0], [0], [1], [0, 0, 1, 1], [], []>} : vector<8x128xf32>, vector<128x128xf32>, vector<8x128xf32> -> vector<8x128xf32>
    %c0_3 = arith.constant 0 : index
    %c0_4 = arith.constant 0 : index
    %3 = vector.load %arg4[%c0_3, %c0_4] : memref<1x128xf32, #tpu.memory_space<vmem>>, vector<1x128xf32>
    %4 = vector.broadcast %3 : vector<1x128xf32> to vector<8x128xf32>
    %5 = arith.addf %2, %4 : vector<8x128xf32>
    %cst_5 = arith.constant 0.000000e+00 : f32
    %6 = vector.broadcast %cst_5 : f32 to vector<8x128xf32>
    %7 = arith.maximumf %5, %6 : vector<8x128xf32>
    %c0_6 = arith.constant 0 : index
    %c0_7 = arith.constant 0 : index
    %8 = vector.load %arg5[%c0_6, %c0_7] : memref<128x128xf32, #tpu.memory_space<vmem>>, vector<128x128xf32>
    %cst_8 = arith.constant dense<0.000000e+00> : vector<8x128xf32>
    %9 = tpu.matmul %7, %8, %cst_8 {dimension_numbers = #tpu.dot_dimension_numbers<[1], [0], [0], [1], [0, 0, 1, 1], [], []>} : vector<8x128xf32>, vector<128x128xf32>, vector<8x128xf32> -> vector<8x128xf32>
    %c0_i32 = arith.constant 0 : i32
    %10 = arith.cmpi eq, %arg1, %c0_i32 : i32
    %11 = arith.extui %10 : i1 to i32
    %c0_i32_9 = arith.constant 0 : i32
    %12 = arith.cmpi ne, %11, %c0_i32_9 : i32
    scf.if %12 {
      %c0_14 = arith.constant 0 : index
      %c0_15 = arith.constant 0 : index
      %19 = vector.load %arg8[%c0_14, %c0_15] : memref<8x128xf32, #tpu.memory_space<vmem>>, vector<8x128xf32>
      tpu.vector_store %arg8[%c0_14, %c0_15], %9 {strides = array<i32>} : memref<8x128xf32, #tpu.memory_space<vmem>>, vector<8x128xf32>,
    } else {
    }
    %c0_i32_10 = arith.constant 0 : i32
    %13 = arith.cmpi sgt, %arg1, %c0_i32_10 : i32
    %14 = arith.extui %13 : i1 to i32
    %c0_i32_11 = arith.constant 0 : i32
    %15 = arith.cmpi ne, %14, %c0_i32_11 : i32
    scf.if %15 {
      %c0_14 = arith.constant 0 : index
      %c0_15 = arith.constant 0 : index
      %19 = vector.load %arg8[%c0_14, %c0_15] : memref<8x128xf32, #tpu.memory_space<vmem>>, vector<8x128xf32>
      %20 = arith.addf %19, %9 : vector<8x128xf32>
      %c0_16 = arith.constant 0 : index
      %c0_17 = arith.constant 0 : index
      %21 = vector.load %arg8[%c0_16, %c0_17] : memref<8x128xf32, #tpu.memory_space<vmem>>, vector<8x128xf32>
      tpu.vector_store %arg8[%c0_16, %c0_17], %20 {strides = array<i32>} : memref<8x128xf32, #tpu.memory_space<vmem>>, vector<8x128xf32>,
    } else {
    }
    %c0_i32_12 = arith.constant 0 : i32
    %16 = arith.cmpi eq, %arg1, %c0_i32_12 : i32
    %17 = arith.extui %16 : i1 to i32
    %c0_i32_13 = arith.constant 0 : i32
    %18 = arith.cmpi ne, %17, %c0_i32_13 : i32
    scf.if %18 {
      %c0_14 = arith.constant 0 : index
      %c0_15 = arith.constant 0 : index
      %19 = vector.load %arg8[%c0_14, %c0_15] : memref<8x128xf32, #tpu.memory_space<vmem>>, vector<8x128xf32>
      %c0_16 = arith.constant 0 : index
      %c0_17 = arith.constant 0 : index
      %20 = vector.load %arg6[%c0_16, %c0_17] : memref<1x128xf32, #tpu.memory_space<vmem>>, vector<1x128xf32>
      %21 = vector.broadcast %20 : vector<1x128xf32> to vector<8x128xf32>
      %22 = arith.addf %19, %21 : vector<8x128xf32>
      %cst_18 = arith.constant 0.000000e+00 : f32
      %23 = vector.broadcast %cst_18 : f32 to vector<8x128xf32>
      %24 = arith.maximumf %22, %23 : vector<8x128xf32>
      %c0_19 = arith.constant 0 : index
      %c0_20 = arith.constant 0 : index
      %25 = vector.load %arg7[%c0_19, %c0_20] : memref<8x128xf32, #tpu.memory_space<vmem>>, vector<8x128xf32>
      tpu.vector_store %arg7[%c0_19, %c0_20], %24 {strides = array<i32>} : memref<8x128xf32, #tpu.memory_space<vmem>>, vector<8x128xf32>,
    } else {
    }
    return
  }
  func.func @transform_0(%arg0: i32, %arg1: i32) -> (i32, i32) {
    %c0_i32 = arith.constant 0 : i32
    %c0_i32_0 = arith.constant 0 : i32
    return %arg0, %c0_i32 : i32, i32
  }
  func.func @transform_1(%arg0: i32, %arg1: i32) -> (i32, i32) {
    %c0_i32 = arith.constant 0 : i32
    %c0_i32_0 = arith.constant 0 : i32
    return %c0_i32, %arg1 : i32, i32
  }
  func.func @transform_2(%arg0: i32, %arg1: i32) -> (i32, i32) {
    %c0_i32 = arith.constant 0 : i32
    %c0_i32_0 = arith.constant 0 : i32
    return %c0_i32, %arg1 : i32, i32
  }
  func.func @transform_3(%arg0: i32, %arg1: i32) -> (i32, i32) {
    %c0_i32 = arith.constant 0 : i32
    %c0_i32_0 = arith.constant 0 : i32
    return %arg1, %c0_i32 : i32, i32
  }
  func.func @transform_4(%arg0: i32, %arg1: i32) -> (i32, i32) {
    %c0_i32 = arith.constant 0 : i32
    %c0_i32_0 = arith.constant 0 : i32
    %c0_i32_1 = arith.constant 0 : i32
    return %c0_i32, %c0_i32_0 : i32, i32
  }
  func.func @transform_5(%arg0: i32, %arg1: i32) -> (i32, i32) {
    %c0_i32 = arith.constant 0 : i32
    %c0_i32_0 = arith.constant 0 : i32
    return %arg0, %c0_i32 : i32, i32
  }
}

</mosaic_0001>

<bundles_post_ra>
// kernel: mlp2_forward.1
= control target key start
LH: loop header
LB: loop body
LE: loop exit
PB: predicated region body
PF: predicated region fallthrough
CT: control target
= control target key end

     0   :  { %10 = vsyncpa [#allocation4], 0  ;;  %s310_s0 = inlined_call_operand.vmem [shape: f32[8,128], index: 0, kind: input, shape index: {}]   ;;  %s311_s1 = inlined_call_operand.hbm [shape: f32[128,128], index: 1, kind: input, shape index: {}]   ;;  %s312_s2 = inlined_call_operand.vmem [shape: f32[1,128], index: 2, kind: input, shape index: {}]   ;;  %s313_s3 = inlined_call_operand.hbm [shape: f32[128,128], index: 3, kind: input, shape index: {}]   ;;  %s314_s4 = inlined_call_operand.vmem [shape: f32[1,128], index: 4, kind: input, shape index: {}]   ;;  %s315_s5 = inlined_call_operand.hbm [shape: f32[8,128], index: 5, kind: output, shape index: {}]  }
   0x1   :  { %11 = vsyncpa [#allocation7], 0 }
   0x2   :  { %12 = vsyncpa [#allocation5], 0  ;;  %s19_s20 = sshll.u32 %s311_s1, 4  ;;  %s257_s21 = smov [#allocation3]   ;;  %s20_s20 = int_to_ptr.hbm [resolvable:$true] %s19_s20 }
   0x3   :  { %s21_s22 = sshll.u32 %s257_s21, 4  ;;  %s34_s25 = sshll.u32 %s313_s3, 4  ;;  %s22_s22 = int_to_ptr.vmem [resolvable:$true] %s21_s22  ;;  %s35_s25 = int_to_ptr.hbm [resolvable:$true] %s34_s25 }
   0x4   :  { %s258_s26 = smov 128   ;;  %s259_s27 = smov 8  }
   0x5   :  { %27 = dma.hbm_to_vmem [thread:$0]  %s20_s20, 2048, %s22_s22, [#allocation4], %s258_s26, %s258_s26, %s259_s27  }
   0x6   :  { %s260_s28 = smov [#allocation6]  }
   0x7   :  { %s36_s29 = sshll.u32 %s260_s28, 4  ;;  %s37_s29 = int_to_ptr.vmem [resolvable:$true] %s36_s29 }
   0x8   :  { %42 = dma.hbm_to_vmem [thread:$0]  %s35_s25, 2048, %s37_s29, [#allocation7], %s258_s26, %s258_s26, %s259_s27  }
   0x9   :  { %251 = dma.done.wait [#allocation4], 2048  }
   0xa   :  { %252 = vsyncadd [#allocation4], 4294965248 }
   0xb   :  { %253 = dma.done.wait [#allocation7], 2048  }
   0xc   :  { %254 = vsyncadd [#allocation7], 4294965248  ;;  %v69_v0 = vld [vmem:[#allocation3 + $0x78] sm:$0xff]  ;;  %v68_v1 = vld [vmem:[#allocation3 + $0x70] sm:$0xff]  ;;  %s161_s12 = sshll.u32 %s315_s5, 4  ;;  %s162_s12 = int_to_ptr.hbm [resolvable:$true] %s161_s12 }
   0xd   :  { %74 = vmatpush.msra.mxu0 %v69_v0  ;;  %v67_v2 = vld [vmem:[#allocation3 + $0x68] sm:$0xff]  ;;  %v66_v3 = vld [vmem:[#allocation3 + $0x60] sm:$0xff]  ;;  %v110_v4 = vld [vmem:[#allocation6 + $0x78] sm:$0xff] }
   0xe   :  { %v65_v5 = vld [vmem:[#allocation3 + $0x58] sm:$0xff]  ;;  %111 = vmatpush.msra.mxu1 %v110_v4  ;;  %v109_v6 = vld [vmem:[#allocation6 + $0x70] sm:$0xff]  ;;  %v108_v7 = vld [vmem:[#allocation6 + $0x68] sm:$0xff] }
   0xf   :  { %75 = vmatpush.msra.mxu0 %v68_v1  ;;  %v64_v8 = vld [vmem:[#allocation3 + $0x50] sm:$0xff]  ;;  %v107_v9 = vld [vmem:[#allocation6 + $0x60] sm:$0xff]  ;;  %v63_v10 = vld [vmem:[#allocation3 + $0x48] sm:$0xff] }
  0x10   :  { %112 = vmatpush.msra.mxu1 %v109_v6  ;;  %v106_v11 = vld [vmem:[#allocation6 + $0x58] sm:$0xff]  ;;  %v62_v12 = vld [vmem:[#allocation3 + $0x40] sm:$0xff]  ;;  %v105_v13 = vld [vmem:[#allocation6 + $0x50] sm:$0xff] }
  0x11   :  { %76 = vmatpush.msra.mxu0 %v67_v2  ;;  %v61_v14 = vld [vmem:[#allocation3 + $0x38] sm:$0xff]  ;;  %v104_v15 = vld [vmem:[#allocation6 + $0x48] sm:$0xff]  ;;  %v60_v16 = vld [vmem:[#allocation3 + $0x30] sm:$0xff] }
  0x12   :  { %113 = vmatpush.msra.mxu1 %v108_v7  ;;  %v103_v17 = vld [vmem:[#allocation6 + $0x40] sm:$0xff]  ;;  %v59_v18 = vld [vmem:[#allocation3 + $0x28] sm:$0xff]  ;;  %v102_v19 = vld [vmem:[#allocation6 + $0x38] sm:$0xff] }
  0x13   :  { %77 = vmatpush.msra.mxu0 %v66_v3  ;;  %v58_v20 = vld [vmem:[#allocation3 + $0x20] sm:$0xff]  ;;  %v101_v21 = vld [vmem:[#allocation6 + $0x30] sm:$0xff]  ;;  %v57_v22 = vld [vmem:[#allocation3 + $0x18] sm:$0xff] }
  0x14   :  { %114 = vmatpush.msra.mxu1 %v107_v9  ;;  %v100_v23 = vld [vmem:[#allocation6 + $0x28] sm:$0xff]  ;;  %v56_v24 = vld [vmem:[#allocation3 + $0x10] sm:$0xff]  ;;  %v99_v25 = vld [vmem:[#allocation6 + $0x20] sm:$0xff] }
  0x15   :  { %78 = vmatpush.msra.mxu0 %v65_v5  ;;  %v55_v26 = vld [vmem:[#allocation3 + $0x8] sm:$0xff]  ;;  %v98_v27 = vld [vmem:[#allocation6 + $0x18] sm:$0xff]  ;;  %v54_v28 = vld [vmem:[#allocation3] sm:$0xff] }
  0x16   :  { %115 = vmatpush.msra.mxu1 %v106_v11  ;;  %v53_v29 = vld [vmem:[%s310_s0] sm:$0xff]  ;;  %v97_v30 = vld [vmem:[#allocation6 + $0x10] sm:$0xff]  ;;  %v96_v31 = vld [vmem:[#allocation6 + $0x8] sm:$0xff]  ;;  %s261_s0 = smov [#allocation8]  }
  0x17   :  { %79 = vmatpush.msra.mxu0 %v64_v8  ;;  %v95_v32 = vld [vmem:[#allocation6] sm:$0xff]  ;;  %s159_s9 = sshll.u32 %s261_s0, 4  ;;  %s160_s9 = int_to_ptr.vmem [resolvable:$true] %s159_s9 }
  0x18   :  { %116 = vmatpush.msra.mxu1 %v105_v13  ;;  %v177_v33 = vld [vmem:[%s312_s2] ss:$0 sm:$0xff] }
  0x19   :  { %80 = vmatpush.msra.mxu0 %v63_v10  ;;  %v178_v37 = vld [vmem:[%s314_s4] ss:$0 sm:$0xff] }
  0x1a   :  { %117 = vmatpush.msra.mxu1 %v104_v15 }
  0x1b   :  { %81 = vmatpush.msra.mxu0 %v62_v12 }
  0x1c   :  { %118 = vmatpush.msra.mxu1 %v103_v17 }
  0x1d   :  { %82 = vmatpush.msra.mxu0 %v61_v14 }
  0x1e   :  { %119 = vmatpush.msra.mxu1 %v102_v19 }
  0x1f   :  { %83 = vmatpush.msra.mxu0 %v60_v16 }
  0x20   :  { %120 = vmatpush.msra.mxu1 %v101_v21 }
  0x21   :  { %84 = vmatpush.msra.mxu0 %v59_v18 }
  0x22   :  { %121 = vmatpush.msra.mxu1 %v100_v23 }
  0x23   :  { %85 = vmatpush.msra.mxu0 %v58_v20 }
  0x24   :  { %122 = vmatpush.msra.mxu1 %v99_v25 }
  0x25   :  { %86 = vmatpush.msra.mxu0 %v57_v22 }
  0x26   :  { %123 = vmatpush.msra.mxu1 %v98_v27 }
  0x27   :  { %87 = vmatpush.msra.mxu0 %v56_v24 }
  0x28   :  { %124 = vmatpush.msra.mxu1 %v97_v30 }
  0x29   :  { %88 = vmatpush.msra.mxu0 %v55_v26 }
  0x2a   :  { %125 = vmatpush.msra.mxu1 %v96_v31 }
  0x2b   :  { %89 = vmatpush.msra.mxu0 %v54_v28 }
  0x2c   :  { %90 = vmatmul.f32.vlgmr.msra.gmra.mxu0 %v53_v29  ;;  %126 = vmatpush.msra.mxu1 %v95_v32 }
  0xa9   :  { %v91_v34 = vpop.f32.mrf.mxu0 }
  0xaa   :  { %v92_v35 = vadd.f32 %v177_v33, %v91_v34 }
  0xac   :  { %v94_v36 = vmax.f32 %v92_v35, 0.0 }
  0xae   :  { %127 = vmatmul.f32.vlgmr.msra.gmra.mxu1 %v94_v36 }
 0x12b   :  { %v128_v38 = vpop.f32.mrf.mxu1 }
 0x12c   :  { %v151_v39 = vadd.f32 %v178_v37, %v128_v38 }
 0x12e   :  { %v152_v40 = vmax.f32 %v151_v39, 0.0 }
 0x130   :  { %153 = vst [vmem:[#allocation8] sm:$0xff] %v152_v40 }
 0x131   :  { %164 = dma.vmem_to_hbm [thread:$0]  %s160_s9, 128, %s162_s12, [#allocation5]  }
 0x132   :  { %255 = dma.done.wait [#allocation5], 128  }
 0x133   :  { %256 = vsyncadd [#allocation5], 4294967168 }
 0x134   :  { %169 = vsyncpa [#allocation4], 1 }
 0x135   :  { %170 = vsyncpa [#allocation7], 1 }
 0x136   :  { %171 = vsyncpa [#allocation5], 1 }

</bundles_post_ra>
